<compile_context>
chip_gen: v7x
topology: tpu7x:2x2x1
jax: 0.10.0
libtpu: 0.0.40
codegen_flags: <defaults>
</compile_context>

<pallas_src>
import functools

import jax
import jax.numpy as jnp
from jax.experimental import pallas as pl
from jax.experimental.pallas import tpu as pltpu

# Real per-call footprint is a few MiB; 32 MiB leaves ample headroom on every
# generation (v5e/v6e 128 MiB physical, v7x 64 MiB physical).
VMEM_LIMIT = 32 * 1024 * 1024
LN_EPS = 1e-12
NER_PAD = 128  # lane-dense padded NER head width


# ----------------------------------------------------------------------------
# In-kernel math helpers (f32)
# ----------------------------------------------------------------------------
def _layer_norm_f32(y, g, b):
    mu = jnp.mean(y, axis=-1, keepdims=True)
    var = jnp.mean(jnp.square(y - mu), axis=-1, keepdims=True)
    return (y - mu) * jax.lax.rsqrt(var + LN_EPS) * g + b


def _gelu_tanh(y):
    c = 0.7978845608028654  # sqrt(2/pi)
    return 0.5 * y * (1.0 + jnp.tanh(c * (y + 0.044715 * y * y * y)))


# ----------------------------------------------------------------------------
# Kernel 1: embedding add (word + type + pos) fused with LayerNorm
# ----------------------------------------------------------------------------
def _emb_ln_kernel(w_ref, t_ref, p_ref, g_ref, b_ref, o_ref):
    y = (w_ref[0].astype(jnp.float32)
         + t_ref[0].astype(jnp.float32)
         + p_ref[0].astype(jnp.float32))                       # (S, H) f32
    o_ref[0] = _layer_norm_f32(y, g_ref[...], b_ref[...]).astype(o_ref.dtype)


def embed_layernorm(word_slab, type_slab, pos_slab, gamma, beta):
    """word/type: (B,S,H) bf16, pos: (1,S,H) bf16 -> LayerNorm(sum) (B,S,H) bf16."""
    B, S, H = word_slab.shape
    return pl.pallas_call(
        _emb_ln_kernel,
        grid=(B,),
        in_specs=[pl.BlockSpec((1, S, H), lambda b: (b, 0, 0)),
                  pl.BlockSpec((1, S, H), lambda b: (b, 0, 0)),
                  pl.BlockSpec((1, S, H), lambda b: (0, 0, 0)),
                  pl.BlockSpec((1, H), lambda b: (0, 0)),
                  pl.BlockSpec((1, H), lambda b: (0, 0))],
        out_specs=pl.BlockSpec((1, S, H), lambda b: (b, 0, 0)),
        out_shape=jax.ShapeDtypeStruct((B, S, H), jnp.bfloat16),
        compiler_params=pltpu.CompilerParams(
            dimension_semantics=("parallel",),
            vmem_limit_bytes=VMEM_LIMIT),
    )(word_slab, type_slab, pos_slab, gamma.reshape(1, H), beta.reshape(1, H))


# ----------------------------------------------------------------------------
# Kernel 2: one full transformer encoder layer (fused)
# ----------------------------------------------------------------------------
def _bert_layer_kernel(x_ref, mask_ref,
                       wqkv_ref, bqkv_ref, wo_ref, bo_ref, g1_ref, b1_ref,
                       wi_ref, bi_ref, wf_ref, bf_ref, g2_ref, b2_ref,
                       o_ref, *, num_heads, head_dim):
    H = num_heads * head_dim
    scale = 1.0 / float(head_dim) ** 0.5
    x = x_ref[0]                                    # (S, H) bf16
    mask = mask_ref[0]                              # (1, S) f32 additive mask

    # --- fused Q|K|V projection: one MXU matmul, f32 accumulation ------------
    qkv = jnp.dot(x, wqkv_ref[...],
                  preferred_element_type=jnp.float32) + bqkv_ref[...]  # (S, 3H)

    # --- per-head attention; whole sequence is resident -> plain softmax -----
    ctx_heads = []
    for h in range(num_heads):                      # static unroll (few heads)
        lo = h * head_dim
        q = (qkv[:, lo:lo + head_dim] * scale).astype(jnp.bfloat16)       # scale folded into q
        k = qkv[:, H + lo:H + lo + head_dim].astype(jnp.bfloat16)
        v = qkv[:, 2 * H + lo:2 * H + lo + head_dim].astype(jnp.bfloat16)
        s = jax.lax.dot_general(q, k, (((1,), (1,)), ((), ())),
                                preferred_element_type=jnp.float32) + mask  # (S, S)
        m = jnp.max(s, axis=-1, keepdims=True)
        p = jnp.exp(s - m)
        l = jnp.sum(p, axis=-1, keepdims=True)
        o_h = jnp.dot(p.astype(jnp.bfloat16), v,
                      preferred_element_type=jnp.float32)
        ctx_heads.append((o_h * pl.reciprocal(l, approx=True)).astype(jnp.bfloat16))
    ctx = jnp.concatenate(ctx_heads, axis=-1)       # (S, H) bf16

    # --- wo projection + residual + LayerNorm1 -------------------------------
    y1 = (jnp.dot(ctx, wo_ref[...], preferred_element_type=jnp.float32)
          + bo_ref[...] + x.astype(jnp.float32))
    x1_f32 = _layer_norm_f32(y1, g1_ref[...], b1_ref[...])
    x1 = x1_f32.astype(jnp.bfloat16)

    # --- FFN: wi + GELU, wf + residual + LayerNorm2 ---------------------------
    h1 = jnp.dot(x1, wi_ref[...], preferred_element_type=jnp.float32) + bi_ref[...]
    h1 = _gelu_tanh(h1).astype(jnp.bfloat16)
    y2 = (jnp.dot(h1, wf_ref[...], preferred_element_type=jnp.float32)
          + bf_ref[...] + x1_f32)
    o_ref[0] = _layer_norm_f32(y2, g2_ref[...], b2_ref[...]).astype(o_ref.dtype)


def bert_layer(x, addmask, lyr, num_heads, head_dim, out_dtype=jnp.bfloat16):
    """x: (B,S,H) bf16, addmask: (B,1,S) f32 -> (B,S,H) out_dtype."""
    B, S, H = x.shape
    I = lyr["wi"].shape[1]

    def const_spec(shape):
        return pl.BlockSpec(shape, lambda b: (0,) * len(shape))

    kern = functools.partial(_bert_layer_kernel,
                             num_heads=num_heads, head_dim=head_dim)
    flops = 2 * B * S * (3 * H * H + 2 * S * H + H * H + 2 * H * I)
    ce = pl.CostEstimate(
        flops=int(flops),
        transcendentals=int(B * S * (num_heads * S + I)),
        bytes_accessed=int(2 * B * S * H * 3
                           + 2 * (3 * H * H + H * H + 2 * H * I)
                           + 4 * (3 * H + 6 * H + I)))
    return pl.pallas_call(
        kern,
        grid=(B,),
        in_specs=[
            pl.BlockSpec((1, S, H), lambda b: (b, 0, 0)),   # activations
            pl.BlockSpec((1, 1, S), lambda b: (b, 0, 0)),   # additive mask
            const_spec((H, 3 * H)), const_spec((1, 3 * H)),
            const_spec((H, H)), const_spec((1, H)),
            const_spec((1, H)), const_spec((1, H)),
            const_spec((H, I)), const_spec((1, I)),
            const_spec((I, H)), const_spec((1, H)),
            const_spec((1, H)), const_spec((1, H)),
        ],
        out_specs=pl.BlockSpec((1, S, H), lambda b: (b, 0, 0)),
        out_shape=jax.ShapeDtypeStruct((B, S, H), out_dtype),
        compiler_params=pltpu.CompilerParams(
            dimension_semantics=("parallel",),
            vmem_limit_bytes=VMEM_LIMIT),
        cost_estimate=ce,
    )(x, addmask,
      lyr["w_qkv"], lyr["b_qkv"].reshape(1, -1),
      lyr["wo"], lyr["bo"].reshape(1, -1),
      lyr["ln1_g"].reshape(1, -1), lyr["ln1_b"].reshape(1, -1),
      lyr["wi"], lyr["bi"].reshape(1, -1),
      lyr["wf"], lyr["bf"].reshape(1, -1),
      lyr["ln2_g"].reshape(1, -1), lyr["ln2_b"].reshape(1, -1))


# ----------------------------------------------------------------------------
# Kernel 3: NER linear head (f32 in, bf16 matmul, lane-dense f32 out)
# ----------------------------------------------------------------------------
def _ner_head_kernel(x_ref, w_ref, b_ref, o_ref):
    x = x_ref[...].astype(jnp.bfloat16)
    o_ref[...] = (jnp.dot(x, w_ref[...], preferred_element_type=jnp.float32)
                  + b_ref[...]).astype(o_ref.dtype)


def ner_head(x, w, b, *, tm=128):
    """x: (M,H) f32, w: (H,128) bf16, b: (128,) f32 -> (M,128) f32 logits."""
    M, K = x.shape
    _, N = w.shape
    tm = min(tm, M)
    assert M % tm == 0
    return pl.pallas_call(
        _ner_head_kernel,
        grid=(M // tm,),
        in_specs=[pl.BlockSpec((tm, K), lambda i: (i, 0)),
                  pl.BlockSpec((K, N), lambda i: (0, 0)),
                  pl.BlockSpec((1, N), lambda i: (0, 0))],
        out_specs=pl.BlockSpec((tm, N), lambda i: (i, 0)),
        out_shape=jax.ShapeDtypeStruct((M, N), jnp.float32),
        compiler_params=pltpu.CompilerParams(
            dimension_semantics=("parallel",),
            vmem_limit_bytes=VMEM_LIMIT),
    )(x, w, b.reshape(1, N))


# ----------------------------------------------------------------------------
# Deterministic parameter init (synthetic small BERT, bf16 weights / f32 biases)
# ----------------------------------------------------------------------------
def init_params(key, vocab=50, max_pos=128, type_vocab=2, H=256,
                num_layers=2, num_heads=2, inter=512, num_ner=9):
    def nrm(k, shape, dtype=jnp.float32):
        return (0.02 * jax.random.normal(k, shape, dtype=jnp.float32)).astype(dtype)

    keys = jax.random.split(key, 8 + num_layers)
    ner_w = nrm(keys[3], (H, num_ner))
    ner_w_pad = jnp.zeros((H, NER_PAD), jnp.float32).at[:, :num_ner].set(ner_w)
    params = {
        "word_emb": nrm(keys[0], (vocab, H), jnp.bfloat16),
        "pos_emb": nrm(keys[1], (max_pos, H), jnp.bfloat16),
        "type_emb": nrm(keys[2], (type_vocab, H), jnp.bfloat16),
        "emb_ln_g": jnp.ones((H,), jnp.float32),
        "emb_ln_b": jnp.zeros((H,), jnp.float32),
        "ner_w": ner_w_pad.astype(jnp.bfloat16),
        "ner_b": jnp.zeros((NER_PAD,), jnp.float32),
        "num_heads": num_heads,
        "num_ner": num_ner,
        "layers": [],
    }
    for li in range(num_layers):
        lk = jax.random.split(keys[8 + li], 6)
        wq = nrm(lk[0], (H, H))
        wk = nrm(lk[1], (H, H))
        wv = nrm(lk[2], (H, H))
        params["layers"].append({
            "w_qkv": jnp.concatenate([wq, wk, wv], axis=1).astype(jnp.bfloat16),
            "b_qkv": jnp.zeros((3 * H,), jnp.float32),
            "wo": nrm(lk[3], (H, H), jnp.bfloat16), "bo": jnp.zeros((H,), jnp.float32),
            "ln1_g": jnp.ones((H,), jnp.float32), "ln1_b": jnp.zeros((H,), jnp.float32),
            "wi": nrm(lk[4], (H, inter), jnp.bfloat16), "bi": jnp.zeros((inter,), jnp.float32),
            "wf": nrm(lk[5], (inter, H), jnp.bfloat16), "bf": jnp.zeros((H,), jnp.float32),
            "ln2_g": jnp.ones((H,), jnp.float32), "ln2_b": jnp.zeros((H,), jnp.float32),
        })
    return params


# ----------------------------------------------------------------------------
# Forward pass: returns (ner_logits, sequence_output) like BertNERRE.forward
# ----------------------------------------------------------------------------
def bert_ner_forward(params, input_ids, attention_mask, token_type_ids=None):
    B, S = input_ids.shape
    H = params["word_emb"].shape[1]
    nh = params["num_heads"]
    d = H // nh

    if token_type_ids is None:
        token_type_ids = jnp.zeros_like(input_ids)

    # Embedding gathers (XLA glue, bf16 tables) -> fused add + LayerNorm kernel.
    word = params["word_emb"][input_ids]                 # (B,S,H) bf16
    typ = params["type_emb"][token_type_ids]             # (B,S,H) bf16
    pos = params["pos_emb"][:S][None, :, :]              # (1,S,H) bf16
    x = embed_layernorm(word, typ, pos,
                        params["emb_ln_g"], params["emb_ln_b"])   # (B,S,H) bf16

    # Additive attention mask, one copy per batch (broadcast over heads in-kernel).
    addmask = ((1.0 - attention_mask.astype(jnp.float32)) * -1e9)[:, None, :]  # (B,1,S)

    # One fused pallas_call per encoder layer; last layer emits f32 directly.
    n_layers = len(params["layers"])
    for li, lyr in enumerate(params["layers"]):
        out_dtype = jnp.float32 if li == n_layers - 1 else jnp.bfloat16
        x = bert_layer(x, addmask, lyr, nh, d, out_dtype=out_dtype)

    sequence_output = x                                   # (B,S,H) f32
    # NER head: lane-dense padded to 128 columns, slice back to num_ner outside.
    ner_padded = ner_head(sequence_output.reshape(B * S, H),
                          params["ner_w"], params["ner_b"])          # (B*S,128) f32
    ner_logits = ner_padded[:, :params["num_ner"]].reshape(B, S, -1)
    return ner_logits, sequence_output


# ----------------------------------------------------------------------------
if __name__ == "__main__":
    B, S, H, NUM_NER = 2, 128, 256, 9
    params = init_params(jax.random.PRNGKey(0), max_pos=S, H=H,
                         num_layers=2, num_heads=2, inter=512, num_ner=NUM_NER)

    key = jax.random.PRNGKey(0)
    k_ids, _ = jax.random.split(key)
    input_ids = jax.random.randint(k_ids, (B, S), 0, 50, dtype=jnp.int32)
    attention_mask = jnp.ones((B, S), dtype=jnp.int32)

    ner_logits, seq_out = bert_ner_forward(params, input_ids, attention_mask)
    jax.block_until_ready((ner_logits, seq_out))

    assert ner_logits.shape == (B, S, NUM_NER)
    assert seq_out.shape == (B, S, H)
    assert seq_out.dtype == jnp.float32
    assert jnp.all(jnp.isfinite(ner_logits)) and jnp.all(jnp.isfinite(seq_out))
    print("KERNEL_OK")
</pallas_src>

<mosaic_0001>
module attributes {stable_mosaic.version = 11 : i64} {
  func.func @_emb_ln_kernel(%arg0: i32, %arg1: memref<1x128x256xbf16, #tpu.memory_space<vmem>>, %arg2: memref<1x128x256xbf16, #tpu.memory_space<vmem>>, %arg3: memref<1x128x256xbf16, #tpu.memory_space<vmem>>, %arg4: memref<1x256xf32, #tpu.memory_space<vmem>>, %arg5: memref<1x256xf32, #tpu.memory_space<vmem>>, %arg6: memref<1x128x256xbf16, #tpu.memory_space<vmem>>) attributes {dimension_semantics = [#tpu.dimension_semantics<parallel>], iteration_bounds = array<i64: 2>, scalar_prefetch = 0 : i64, scratch_operands = 0 : i64, tpu.core_type = #tpu.core_type<tc>, window_params = [{transform_indices = @transform_0, window_bounds = array<i64: 1, 128, 256>}, {transform_indices = @transform_1, window_bounds = array<i64: 1, 128, 256>}, {pipeline_mode = #tpu.pipeline_mode<synchronous>, transform_indices = @transform_2, window_bounds = array<i64: 1, 128, 256>}, {pipeline_mode = #tpu.pipeline_mode<synchronous>, transform_indices = @transform_3, window_bounds = array<i64: 1, 256>}, {pipeline_mode = #tpu.pipeline_mode<synchronous>, transform_indices = @transform_4, window_bounds = array<i64: 1, 256>}, {transform_indices = @transform_5, window_bounds = array<i64: 1, 128, 256>}]} {
    %c0 = arith.constant 0 : index
    %c0_0 = arith.constant 0 : index
    %c0_1 = arith.constant 0 : index
    %0 = vector.load %arg1[%c0, %c0_0, %c0_1] : memref<1x128x256xbf16, #tpu.memory_space<vmem>>, vector<1x128x256xbf16>
    %1 = vector.shape_cast %0 : vector<1x128x256xbf16> to vector<128x256xbf16>
    %2 = arith.extf %1 : vector<128x256xbf16> to vector<128x256xf32>
    %c0_2 = arith.constant 0 : index
    %c0_3 = arith.constant 0 : index
    %c0_4 = arith.constant 0 : index
    %3 = vector.load %arg2[%c0_2, %c0_3, %c0_4] : memref<1x128x256xbf16, #tpu.memory_space<vmem>>, vector<1x128x256xbf16>
    %4 = vector.shape_cast %3 : vector<1x128x256xbf16> to vector<128x256xbf16>
    %5 = arith.extf %4 : vector<128x256xbf16> to vector<128x256xf32>
    %6 = arith.addf %2, %5 : vector<128x256xf32>
    %c0_5 = arith.constant 0 : index
    %c0_6 = arith.constant 0 : index
    %c0_7 = arith.constant 0 : index
    %7 = vector.load %arg3[%c0_5, %c0_6, %c0_7] : memref<1x128x256xbf16, #tpu.memory_space<vmem>>, vector<1x128x256xbf16>
    %8 = vector.shape_cast %7 : vector<1x128x256xbf16> to vector<128x256xbf16>
    %9 = arith.extf %8 : vector<128x256xbf16> to vector<128x256xf32>
    %10 = arith.addf %6, %9 : vector<128x256xf32>
    %c0_8 = arith.constant 0 : index
    %c0_9 = arith.constant 0 : index
    %11 = vector.load %arg4[%c0_8, %c0_9] : memref<1x256xf32, #tpu.memory_space<vmem>>, vector<1x256xf32>
    %c0_10 = arith.constant 0 : index
    %c0_11 = arith.constant 0 : index
    %12 = vector.load %arg5[%c0_10, %c0_11] : memref<1x256xf32, #tpu.memory_space<vmem>>, vector<1x256xf32>
    %cst = arith.constant dense<0.000000e+00> : vector<128xf32>
    %13 = vector.multi_reduction <add>, %10, %cst [1] : vector<128x256xf32> to vector<128xf32>
    %14 = vector.shape_cast %13 : vector<128xf32> to vector<128x1xf32>
    %cst_12 = arith.constant 2.560000e+02 : f32
    %15 = vector.broadcast %cst_12 : f32 to vector<128x1xf32>
    %16 = arith.divf %14, %15 : vector<128x1xf32>
    %17 = vector.broadcast %16 : vector<128x1xf32> to vector<128x256xf32>
    %18 = arith.subf %10, %17 : vector<128x256xf32>
    %19 = arith.mulf %18, %18 : vector<128x256xf32>
    %cst_13 = arith.constant dense<0.000000e+00> : vector<128xf32>
    %20 = vector.multi_reduction <add>, %19, %cst_13 [1] : vector<128x256xf32> to vector<128xf32>
    %21 = vector.shape_cast %20 : vector<128xf32> to vector<128x1xf32>
    %cst_14 = arith.constant 2.560000e+02 : f32
    %22 = vector.broadcast %cst_14 : f32 to vector<128x1xf32>
    %23 = arith.divf %21, %22 : vector<128x1xf32>
    %24 = vector.broadcast %16 : vector<128x1xf32> to vector<128x256xf32>
    %25 = arith.subf %10, %24 : vector<128x256xf32>
    %cst_15 = arith.constant 9.99999996E-13 : f32
    %26 = vector.broadcast %cst_15 : f32 to vector<128x1xf32>
    %27 = arith.addf %23, %26 : vector<128x1xf32>
    %28 = math.rsqrt %27 : vector<128x1xf32>
    %29 = vector.broadcast %28 : vector<128x1xf32> to vector<128x256xf32>
    %30 = arith.mulf %25, %29 : vector<128x256xf32>
    %31 = vector.broadcast %11 : vector<1x256xf32> to vector<128x256xf32>
    %32 = arith.mulf %30, %31 : vector<128x256xf32>
    %33 = vector.broadcast %12 : vector<1x256xf32> to vector<128x256xf32>
    %34 = arith.addf %32, %33 : vector<128x256xf32>
    %35 = arith.truncf %34 : vector<128x256xf32> to vector<128x256xbf16>
    %c0_16 = arith.constant 0 : index
    %c0_17 = arith.constant 0 : index
    %c0_18 = arith.constant 0 : index
    %36 = vector.load %arg6[%c0_16, %c0_17, %c0_18] : memref<1x128x256xbf16, #tpu.memory_space<vmem>>, vector<1x128x256xbf16>
    %37 = vector.shape_cast %36 : vector<1x128x256xbf16> to vector<128x256xbf16>
    %38 = vector.shape_cast %35 : vector<128x256xbf16> to vector<1x128x256xbf16>
    tpu.vector_store %arg6[%c0_16, %c0_17, %c0_18], %38 {strides = array<i32>} : memref<1x128x256xbf16, #tpu.memory_space<vmem>>, vector<1x128x256xbf16>,
    return
  }
  func.func @transform_0(%arg0: i32) -> (i32, i32, i32) {
    %c0_i32 = arith.constant 0 : i32
    %c0_i32_0 = arith.constant 0 : i32
    %c0_i32_1 = arith.constant 0 : i32
    return %arg0, %c0_i32, %c0_i32_0 : i32, i32, i32
  }
  func.func @transform_1(%arg0: i32) -> (i32, i32, i32) {
    %c0_i32 = arith.constant 0 : i32
    %c0_i32_0 = arith.constant 0 : i32
    %c0_i32_1 = arith.constant 0 : i32
    return %arg0, %c0_i32, %c0_i32_0 : i32, i32, i32
  }
  func.func @transform_2(%arg0: i32) -> (i32, i32, i32) {
    %c0_i32 = arith.constant 0 : i32
    %c0_i32_0 = arith.constant 0 : i32
    %c0_i32_1 = arith.constant 0 : i32
    %c0_i32_2 = arith.constant 0 : i32
    return %c0_i32, %c0_i32_0, %c0_i32_1 : i32, i32, i32
  }
  func.func @transform_3(%arg0: i32) -> (i32, i32) {
    %c0_i32 = arith.constant 0 : i32
    %c0_i32_0 = arith.constant 0 : i32
    %c0_i32_1 = arith.constant 0 : i32
    return %c0_i32, %c0_i32_0 : i32, i32
  }
  func.func @transform_4(%arg0: i32) -> (i32, i32) {
    %c0_i32 = arith.constant 0 : i32
    %c0_i32_0 = arith.constant 0 : i32
    %c0_i32_1 = arith.constant 0 : i32
    return %c0_i32, %c0_i32_0 : i32, i32
  }
  func.func @transform_5(%arg0: i32) -> (i32, i32, i32) {
    %c0_i32 = arith.constant 0 : i32
    %c0_i32_0 = arith.constant 0 : i32
    %c0_i32_1 = arith.constant 0 : i32
    return %arg0, %c0_i32, %c0_i32_0 : i32, i32, i32
  }
}

</mosaic_0001>

<bundles_post_ra>
// kernel: tpu_custom_call.1
= control target key start
LH: loop header
LB: loop body
LE: loop exit
PB: predicated region body
PF: predicated region fallthrough
CT: control target
= control target key end

     0   :  { %s2115_s0 = inlined_call_operand.hbm [shape: bf16[2,128,256], index: 0, kind: input, shape index: {}]   ;;  %s2116_s1 = inlined_call_operand.hbm [shape: bf16[2,128,256], index: 1, kind: input, shape index: {}]   ;;  %s2117_s2 = inlined_call_operand.hbm [shape: bf16[1,128,256], index: 2, kind: input, shape index: {}]   ;;  %s2118_s3 = inlined_call_operand.vmem [shape: f32[1,256], index: 3, kind: input, shape index: {}]   ;;  %s2119_s4 = inlined_call_operand.vmem [shape: f32[1,256], index: 4, kind: input, shape index: {}]   ;;  %s2120_s5 = inlined_call_operand.hbm [shape: bf16[2,128,256], index: 5, kind: output, shape index: {}]  }
   0x1   :  { %2129 = sst [smem:[#allocation15_spill]] %s2115_s0 }
   0x2   :  { %2130 = sst [smem:[#allocation16_spill]] %s2117_s2 }
   0x3   :  { %10 = vsyncpa [#allocation3], 0 }
   0x4   :  { %12 = vsyncpa [#allocation3 + $0x1], 0 }
   0x5   :  { %13 = vsyncpa [#allocation6], 0 }
   0x6   :  { %15 = vsyncpa [#allocation6 + $0x1], 0 }
   0x7   :  { %16 = vsyncpa [#allocation4], 0 }
   0x8   :  { %18 = vsyncpa [#allocation4 + $0x1], 0  ;;  %s1436_s18 = smov 0   ;;  %s1438_s19 = smov 0  }
   0x9   :  { %s1440_s20 = smov 0   ;;  %s1442_s21 = smov 0  }
   0xa LB: > { %2131 = sst [smem:[#allocation13_spill]] %s1392_s20  ;;  %s1457_s22 = sadd.s32 4294967295, %s1396_s21   ;;  %s1396_s21 = sphi %s1442_s21, %s2154_s21   ;;  %s1392_s20 = sphi %s1440_s20, %s2151_s20   ;;  %s1388_s19 = sphi %s1438_s19, %s2153_s19   ;;  %s1384_s18 = sphi %s1436_s18, %s2152_s18  }
   0xb   : > { %s1081_s23 = sadd.s32 4294967294, %s1396_s21   ;;  %p44_p0 = scmp.ne.s32.totalorder %s1388_s19, %s1384_s18 }
   0xc   : > { %p2121_p1 = scmp.eq.s32.totalorder %s1457_s22, 0  ;;  %p163_p3 = scmp.eq.s32.totalorder %s1081_s23, 1 }
   0xd   : > { %p1082_p5 = scmp.ge.s32.totalorder %s1396_s21, 1  ;;  %p170_p7 = scmp.lt.s32.totalorder %s1396_s21, 3 }
   0xe   : > { %p1466_p4 = por %p2121_p1, %p44_p0  ;;  %p1471_p6 = por %p163_p3, %p44_p0 }
   0xf   : > { %p1476_p8 = pnand %p1082_p5, %p170_p7  ;;  %s1398_s27 = smov [#allocation7]  }
  0x10   : > { %s2132_s24 = scalar_select %p1466_p4, 1, 0 }
  0x11   : > { %s2133_s25 = scalar_select %p1471_p6, 1, 0 }
  0x12   : > { %s2134_s26 = scalar_select %p1476_p8, 1, 0 }
  0x13   : > { %s182_s28 = sshll.u32 %s1398_s27, 4  ;;  %p1146_p9 = pneg %p1476_p8  ;;  %s1480_s28 = int_to_ptr.vmem [resolvable:$true] %s182_s28 }
  0x14   : > { %s1492_s30 = sadd.s32 1, %s1396_s21   ;;  %s31_s6 = sadd.s32 1, %s1392_s20 }
  0x15   : > { %p1487_p11 = pnand %p1146_p9, %p2121_p1  ;;  %s28_s7 = ssub.s32 %s1396_s21, %s1492_s30 }
  0x16   : > { %s2136_s2 = sld [smem:[#allocation16_spill]] }
  0x17   : > { %p1236_p13 = pneg %p1487_p11 }
  0x1c   : > { %s1234_s10 = scalar_lea.hbm %s2136_s2, 2048 }
  0x1d   : > { %p1235_p12 = scmp.ne.s32.totalorder %s2136_s2, %s1234_s10  ;;  %p1241_p5 = scmp.lt.u32.totalorder %s1234_s10, %s2136_s2 }
  0x1f   : > { %p1237_p0 = pnand %p1236_p13, %p1235_p12 }
  0x21   : > { %p1238_p3 = pneg %p1237_p0 }
  0x23   : > { %p1243_p7 = pnand %p1241_p5, %p1238_p3 }
  0x25   : > { %1246 = shalt.err (!%p1243_p7)
}
  0x26   : > { %s1247_s15 = scalar_lea.vmem %s1480_s28, 2048  ;;  %p1255_p2 = scmp.lt.s32.totalorder %s1480_s28, %s1480_s28 }
  0x27   : > { %p1248_p9 = scmp.ne.s32.totalorder %s1480_s28, %s1247_s15  ;;  %p1256_p6 = scmp.lt.s32.totalorder %s1247_s15, %s1247_s15 }
  0x29   : > { %p1250_p10 = pnand %p1248_p9, %p1236_p13  ;;  %p1257_p4 = por %p1256_p6, %p1255_p2 }
  0x2b   : > { %p1251_p1 = pneg %p1250_p10 }
  0x2d   : > { %p1258_p8 = pnand %p1257_p4, %p1251_p1 }
  0x2f   : > { %1261 = shalt.err (!%p1258_p8)
}
  0x30   : > { %s2124_s16 = smov 128   ;;  %s2126_s17 = smov 8  }
  0x31   : > { %1149 = dma.hbm_to_vmem [thread:$0]  (!%p1487_p11), %s2136_s2, 2048, %s1480_s28, [#allocation6], %s2124_s16, %s2124_s16, %s2126_s17  }
  0x32   : > { %p29_p1 = scmp.eq.s32.totalorder %s28_s7, 0  ;;  %p38_p2 = scmp.ne.s32.totalorder %s1392_s20, %s1388_s19 }
  0x33   : > { %p39_p4 = scmp.eq.s32.totalorder %s1396_s21, 0  ;;  %p1162_p6 = scmp.lt.s32.totalorder %s1396_s21, 2 }
  0x34   : > { %s1526_s8 = scalar_select %p29_p1, %s1392_s20, %s31_s6  }
  0x35   : > { %p40_p8 = por %p39_p4, %p38_p2  ;;  %p2138_p10 = scmp.eq.s32.totalorder %s1457_s22, 1 }
  0x36   : > { %2137 = sst [smem:[#allocation14_spill]] %s1526_s8  ;;  %s202_s29 = sand.u32 1, %s1392_s20  }
  0x37   : > { %p1530_p12 = por %p2138_p10, %p38_p2  ;;  %s1117_s10 = sshll.u32 %s1396_s21, 11 }
  0x38   : > { %s1536_s11 = sshll.u32 %s202_s29, 7  ;;  %s2140_s0 = sld [smem:[#allocation15_spill]] }
  0x39   : > { %s206_s6 = scalar_lea.vmem [#allocation2], %s1536_s11  ;;  %p1544_p11 = pnand %p1162_p6, %p40_p8 }
  0x3a   : > { %s213_s7 = sshll.u32 %s206_s6, 4  ;;  %s1553_s27 = scalar_lea.hbm %s2116_s1, %s1117_s10  ;;  %s1548_s7 = int_to_ptr.vmem [resolvable:$true] %s213_s7 }
  0x3b   : > { %s1555_s12 = scalar_lea.sflag [#allocation3], %s202_s29  ;;  %p1264_p0 = pneg %p1544_p11 }
  0x3e   : > { %s1541_s28 = scalar_lea.hbm %s2140_s0, %s1117_s10  ;;  %s1267_s17 = scalar_lea.hbm %s2140_s0, 4096 }
  0x3f   : > { %s1262_s13 = scalar_lea.hbm %s1541_s28, 2048  ;;  %p1268_p7 = scmp.lt.u32.totalorder %s1541_s28, %s2140_s0 }
  0x40   : > { %p1263_p13 = scmp.ne.s32.totalorder %s1541_s28, %s1262_s13  ;;  %p1269_p9 = scmp.lt.u32.totalorder %s1267_s17, %s1262_s13 }
  0x41   : > { %p1271_p2 = scmp.lt.u32.totalorder %s1262_s13, %s1541_s28 }
  0x42   : > { %p1265_p3 = pnand %p1264_p0, %p1263_p13  ;;  %p1270_p1 = por %p1269_p9, %p1268_p7 }
  0x44   : > { %p1266_p5 = pneg %p1265_p3  ;;  %p1272_p4 = por %p1271_p2, %p1270_p1 }
  0x46   : > { %p1273_p6 = pnand %p1272_p4, %p1266_p5 }
  0x48   : > { %1276 = shalt.err (!%p1273_p6)
}
  0x49   : > { %s1277_s29 = scalar_lea.vmem %s1548_s7, 2048  ;;  %s1401_s16 = smov [#allocation2]  }
  0x4a   : > { %p1278_p8 = scmp.ne.s32.totalorder %s1548_s7, %s1277_s29  ;;  %s1282_s10 = sshll.u32 %s1401_s16, 4  ;;  %s1283_s10 = int_to_ptr.vmem [resolvable:$false] %s1282_s10 }
  0x4b   : > { %s1284_s2 = scalar_lea.vmem %s1283_s10, 4096  ;;  %p1285_p3 = scmp.lt.s32.totalorder %s1548_s7, %s1283_s10 }
  0x4c   : > { %p1280_p10 = pnand %p1278_p8, %p1264_p0  ;;  %p1286_p7 = scmp.lt.s32.totalorder %s1284_s2, %s1277_s29 }
  0x4e   : > { %p1281_p13 = pneg %p1280_p10  ;;  %p1287_p9 = por %p1286_p7, %p1285_p3 }
  0x50   : > { %p1288_p1 = pnand %p1287_p9, %p1281_p13 }
  0x52   : > { %1291 = shalt.err (!%p1288_p1)
}
  0x53   : > { %s2142_s17 = smov 8   ;;  %s2143_s8 = smov 128  }
  0x54   : > { %1153 = dma.hbm_to_vmem [thread:$0]  (!%p1544_p11), %s1541_s28, 2048, %s1548_s7, %s1555_s12, %s2143_s8, %s2143_s8, %s2142_s17  }
  0x55   : > { %s227_s15 = scalar_lea.vmem [#allocation5], %s1536_s11  ;;  %s223_s13 = sand.u32 1, %s1396_s21  }
  0x56   : > { %s234_s23 = sshll.u32 %s227_s15, 4  ;;  %s1590_s6 = scalar_lea.sflag [#allocation6], %s223_s13  ;;  %s1588_s23 = int_to_ptr.vmem [resolvable:$true] %s234_s23 }
  0x57   : > { %s1292_s29 = scalar_lea.hbm %s1553_s27, 2048  ;;  %s1297_s2 = scalar_lea.hbm %s2116_s1, 4096 }
  0x58   : > { %p1293_p5 = scmp.ne.s32.totalorder %s1553_s27, %s1292_s29  ;;  %p1298_p6 = scmp.lt.u32.totalorder %s1553_s27, %s2116_s1 }
  0x59   : > { %p1299_p8 = scmp.lt.u32.totalorder %s1297_s2, %s1292_s29  ;;  %p1301_p13 = scmp.lt.u32.totalorder %s1292_s29, %s1553_s27 }
  0x5a   : > { %p1295_p2 = pnand %p1293_p5, %p1264_p0 }
  0x5b   : > { %p1300_p10 = por %p1299_p8, %p1298_p6 }
  0x5c   : > { %p1296_p4 = pneg %p1295_p2 }
  0x5d   : > { %p1302_p3 = por %p1301_p13, %p1300_p10 }
  0x5f   : > { %p1303_p7 = pnand %p1302_p3, %p1296_p4 }
  0x61   : > { %1306 = shalt.err (!%p1303_p7)
}
  0x62   : > { %s1307_s11 = scalar_lea.vmem %s1588_s23, 2048  ;;  %s1402_s28 = smov [#allocation5]  }
  0x63   : > { %p1308_p9 = scmp.ne.s32.totalorder %s1588_s23, %s1307_s11  ;;  %s1312_s7 = sshll.u32 %s1402_s28, 4  ;;  %s1313_s7 = int_to_ptr.vmem [resolvable:$false] %s1312_s7 }
  0x64   : > { %s1314_s0 = scalar_lea.vmem %s1313_s7, 4096  ;;  %p1315_p2 = scmp.lt.s32.totalorder %s1588_s23, %s1313_s7 }
  0x65   : > { %p1310_p1 = pnand %p1308_p9, %p1264_p0  ;;  %p1316_p6 = scmp.lt.s32.totalorder %s1314_s0, %s1307_s11 }
  0x67   : > { %p1311_p5 = pneg %p1310_p1  ;;  %p1317_p8 = por %p1316_p6, %p1315_p2 }
  0x69   : > { %p1318_p10 = pnand %p1317_p8, %p1311_p5 }
  0x6b   : > { %1321 = shalt.err (!%p1318_p10)
}
  0x6c   : > { %1156 = dma.hbm_to_vmem [thread:$0]  (!%p1544_p11), %s1553_s27, 2048, %s1588_s23, %s1590_s6, %s2143_s8, %s2143_s8, %s2142_s17  }
  0x6d   : > { %p2144_p0 = scmp.ne.s32.totalorder %s2134_s26, 0 }
  0x6e   : > { %s1622_s20 = sand.u32 (!%p2144_p0), 1, %s1388_s19   ;;  %p2145_p4 = scmp.ne.s32.totalorder (!%p2144_p0), %s2132_s24, 0 }
  0x6f   : > { %246 = sbr.rel (%p2144_p0) target bundleno = 507 (0x1fb), region = 40  ;;  %s1625_s12 = sshll.u32 (!%p2144_p0), %s1622_s20, 7 }
  0x70   : > { %s249_s14 = scalar_lea.sflag (!%p2144_p0), [#allocation3], %s1622_s20  ;;  %s1629_s15 = scalar_lea.vmem (!%p2144_p0), [#allocation2], %s1625_s12 }
  0x76   : > { %1367 = dma.done.wait (%p2145_p4), %s249_s14, 2048  }
  0x77   : > { %1369 = vsyncadd (%p2145_p4), %s249_s14, 4294965248  ;;  %s257_s26 = sand.u32 1, %s1457_s22   ;;  %s1637_s17 = scalar_lea.vmem [#allocation5], %s1625_s12 }
  0x78   : > { %s258_s27 = scalar_lea.sflag [#allocation6], %s257_s26 }
  0x79   : > { %1371 = dma.done.wait (%p2145_p4), %s258_s27, 2048  }
  0x7a   : > { %1373 = vsyncadd (%p2145_p4), %s258_s27, 4294965248  ;;  %p2146_p11 = scmp.eq.s32.totalorder %s1457_s22, 0 }
  0x7c   : > { %1375 = dma.done.wait (%p2146_p11), [#allocation6], 2048   ;;  %p2147_p13 = pmov %p2146_p11 }
  0x7d   : > { %v297_v0 = vld [vmem:[%s1629_s15] sm:$0xff]  ;;  %v299_v7 = vld [vmem:[%s1629_s15 + $0x10] sm:$0xff]  ;;  %v298_v14 = vld [vmem:[%s1629_s15 + $0x8] sm:$0xff]  ;;  %s1964_s6 = scalar_lea.vmem [#allocation8], %s1625_s12  ;;  %s1135_s29 = sshll.u32 %s1457_s22, 11 }
  0x7e   : > { %1377 = vsyncadd (%p2147_p13), [#allocation6], 4294965248  ;;  %v345_v1 = vld [vmem:[%s1637_s17] sm:$0xff]  ;;  %v313_v3 = vunpack.c.l.bf16 %v297_v0  ;;  %v314_v4 = vunpack.c.h.bf16 %v297_v0  ;;  %v347_v8 = vld [vmem:[%s1637_s17 + $0x10] sm:$0xff]  ;;  %v317_v12 = vunpack.c.l.bf16 %v299_v7  ;;  %v318_v13 = vunpack.c.h.bf16 %v299_v7  ;;  %s976_s16 = sshll.u32 %s1964_s6, 4  ;;  %s2068_s11 = scalar_lea.hbm %s2120_s5, %s1135_s29  ;;  %s2070_s16 = int_to_ptr.vmem [resolvable:$true] %s976_s16 }
  0x7f   : > { %v425_v2 = vld [vmem:[#allocation7] sm:$0xff]  ;;  %v361_v5 = vunpack.c.l.bf16 %v345_v1  ;;  %v362_v6 = vunpack.c.h.bf16 %v345_v1  ;;  %v427_v9 = vld [vmem:[#allocation7 + $0x10] sm:$0xff]  ;;  %v365_v17 = vunpack.c.l.bf16 %v347_v8  ;;  %v366_v18 = vunpack.c.h.bf16 %v347_v8  ;;  %v346_v19 = vld [vmem:[%s1637_s17 + $0x8] sm:$0xff]  ;;  %s963_s28 = scalar_lea.sflag [#allocation4], %s1622_s20  ;;  %s1322_s22 = scalar_lea.vmem %s2070_s16, 2048 }
  0x80   : > { %v441_v10 = vunpack.c.l.bf16 %v425_v2  ;;  %v442_v11 = vunpack.c.h.bf16 %v425_v2  ;;  %v426_v20 = vld [vmem:[#allocation7 + $0x8] sm:$0xff]  ;;  %v445_v21 = vunpack.c.l.bf16 %v427_v9  ;;  %v446_v22 = vunpack.c.h.bf16 %v427_v9  ;;  %v300_v25 = vld [vmem:[%s1629_s15 + $0x18] sm:$0xff]  ;;  %v301_v40 = vld [vmem:[%s1629_s15 + $0x20] sm:$0xff]  ;;  %p1323_p3 = scmp.ne.s32.totalorder %s2070_s16, %s1322_s22  ;;  %s1403_s7 = smov [#allocation8]  }
  0x81   : > { %v393_v15 = vadd.f32 %v361_v5, %v313_v3  ;;  %v394_v16 = vadd.f32 %v362_v6, %v314_v4  ;;  %v315_v23 = vunpack.c.l.bf16 %v298_v14  ;;  %v316_v24 = vunpack.c.h.bf16 %v298_v14  ;;  %v348_v30 = vld [vmem:[%s1637_s17 + $0x18] sm:$0xff]  ;;  %v349_v45 = vld [vmem:[%s1637_s17 + $0x20] sm:$0xff]  ;;  %v302_v55 = vld [vmem:[%s1629_s15 + $0x28] sm:$0xff]  ;;  %s1326_s0 = sshll.u32 %s1403_s7, 4  ;;  %s1327_s0 = int_to_ptr.vmem [resolvable:$false] %s1326_s0 }
  0x82   : > { %v397_v28 = vadd.f32 %v365_v17, %v317_v12  ;;  %v398_v29 = vadd.f32 %v366_v18, %v318_v13  ;;  %v363_v31 = vunpack.c.l.bf16 %v346_v19  ;;  %v364_v32 = vunpack.c.h.bf16 %v346_v19  ;;  %v428_v35 = vld [vmem:[#allocation7 + $0x18] sm:$0xff]  ;;  %v429_v50 = vld [vmem:[#allocation7 + $0x20] sm:$0xff]  ;;  %v350_v60 = vld [vmem:[%s1637_s17 + $0x28] sm:$0xff]  ;;  %p1324_p7 = pnand %p1323_p3, %p1530_p12  ;;  %s1328_s12 = scalar_lea.vmem %s1327_s0, 4096 }
  0x83   : > { %v1654_v26 = vadd.f32 %v441_v10, %v393_v15  ;;  %v1656_v27 = vadd.f32 %v442_v11, %v394_v16  ;;  %v443_v33 = vunpack.c.l.bf16 %v426_v20  ;;  %v444_v34 = vunpack.c.h.bf16 %v426_v20  ;;  %v430_v61 = vld [vmem:[#allocation7 + $0x28] sm:$0xff]  ;;  %v303_v6 = vld [vmem:[%s1629_s15 + $0x30] sm:$0xff]  ;;  %v304_v17 = vld [vmem:[%s1629_s15 + $0x38] sm:$0xff]  ;;  %p1329_p1 = scmp.lt.s32.totalorder %s2070_s16, %s1327_s0  ;;  %p1330_p5 = scmp.lt.s32.totalorder %s1328_s12, %s1322_s22 }
  0x84   : > { %v1661_v37 = vadd.f32 %v445_v21, %v397_v28  ;;  %v1663_v38 = vadd.f32 %v446_v22, %v398_v29  ;;  %v319_v39 = vunpack.c.l.bf16 %v300_v25  ;;  %v395_v41 = vadd.f32 %v363_v31, %v315_v23  ;;  %v351_v11 = vld [vmem:[%s1637_s17 + $0x30] sm:$0xff]  ;;  %v352_v22 = vld [vmem:[%s1637_s17 + $0x38] sm:$0xff]  ;;  %p1325_p9 = pneg %p1324_p7 }
  0x85   : > { %v507_v36 = vadd.f32 %v1656_v27, %v1654_v26  ;;  %v396_v42 = vadd.f32 %v364_v32, %v316_v24  ;;  %v320_v43 = vunpack.c.h.bf16 %v300_v25  ;;  %v367_v44 = vunpack.c.l.bf16 %v348_v30  ;;  %v431_v12 = vld [vmem:[#allocation7 + $0x30] sm:$0xff]  ;;  %v432_v29 = vld [vmem:[#allocation7 + $0x38] sm:$0xff]  ;;  %p1331_p2 = por %p1330_p5, %p1329_p1 }
  0x86   : > { %v513_v46 = vadd.f32 %v1663_v38, %v1661_v37  ;;  %v368_v47 = vunpack.c.h.bf16 %v348_v30  ;;  %v447_v48 = vunpack.c.l.bf16 %v428_v35  ;;  %v448_v49 = vunpack.c.h.bf16 %v428_v35 }
  0x87   : > { %508 = vadd.xlane.f32.xlu0 %v507_v36  ;;  %v1669_v51 = vadd.f32 %v443_v33, %v395_v41  ;;  %v1671_v52 = vadd.f32 %v444_v34, %v396_v42  ;;  %v399_v53 = vadd.f32 %v367_v44, %v319_v39  ;;  %v321_v54 = vunpack.c.l.bf16 %v301_v40  ;;  %v305_v34 = vld [vmem:[%s1629_s15 + $0x40] sm:$0xff]  ;;  %p1332_p6 = pnand %p1331_p2, %p1325_p9 }
  0x88   : > { %514 = vadd.xlane.f32.xlu1 %v513_v46  ;;  %v400_v56 = vadd.f32 %v368_v47, %v320_v43  ;;  %v322_v57 = vunpack.c.h.bf16 %v301_v40  ;;  %v369_v58 = vunpack.c.l.bf16 %v349_v45  ;;  %v370_v59 = vunpack.c.h.bf16 %v349_v45  ;;  %v353_v41 = vld [vmem:[%s1637_s17 + $0x40] sm:$0xff] }
  0x89   : > { %v510_v62 = vadd.f32 %v1671_v52, %v1669_v51  ;;  %v1677_v63 = vadd.f32 %v447_v48, %v399_v53  ;;  %v449_v0 = vunpack.c.l.bf16 %v429_v50  ;;  %v450_v1 = vunpack.c.h.bf16 %v429_v50  ;;  %v433_v46 = vld [vmem:[#allocation7 + $0x40] sm:$0xff]  ;;  %v306_v53 = vld [vmem:[%s1629_s15 + $0x48] sm:$0xff] }
  0x8a   : > { %v1679_v2 = vadd.f32 %v448_v49, %v400_v56  ;;  %v401_v3 = vadd.f32 %v369_v58, %v321_v54  ;;  %v402_v4 = vadd.f32 %v370_v59, %v322_v57  ;;  %v323_v5 = vunpack.c.l.bf16 %v302_v55  ;;  %v354_v58 = vld [vmem:[%s1637_s17 + $0x48] sm:$0xff] }
  0x8b   : > { %511 = vadd.xlane.f32.xlu0 %v510_v62  ;;  %v324_v7 = vunpack.c.h.bf16 %v302_v55  ;;  %v371_v8 = vunpack.c.l.bf16 %v350_v60  ;;  %v372_v9 = vunpack.c.h.bf16 %v350_v60  ;;  %v451_v10 = vunpack.c.l.bf16 %v430_v61  ;;  %v434_v59 = vld [vmem:[#allocation7 + $0x48] sm:$0xff] }
  0x8c   : > { %v516_v13 = vadd.f32 %v1679_v2, %v1677_v63  ;;  %v1685_v14 = vadd.f32 %v449_v0, %v401_v3  ;;  %v1687_v15 = vadd.f32 %v450_v1, %v402_v4  ;;  %v452_v16 = vunpack.c.h.bf16 %v430_v61 }
  0x8d   : > { %v403_v18 = vadd.f32 %v371_v8, %v323_v5  ;;  %v404_v19 = vadd.f32 %v372_v9, %v324_v7  ;;  %v325_v20 = vunpack.c.l.bf16 %v303_v6  ;;  %v326_v21 = vunpack.c.h.bf16 %v303_v6  ;;  %v307_v6 = vld [vmem:[%s1629_s15 + $0x50] sm:$0xff] }
  0x8e   : > { %517 = vadd.xlane.f32.xlu1 %v516_v13  ;;  %v519_v23 = vadd.f32 %v1687_v15, %v1685_v14  ;;  %v373_v24 = vunpack.c.l.bf16 %v351_v11  ;;  %v374_v25 = vunpack.c.h.bf16 %v351_v11  ;;  %v453_v28 = vunpack.c.l.bf16 %v431_v12  ;;  %v355_v11 = vld [vmem:[%s1637_s17 + $0x50] sm:$0xff] }
  0x8f   : > { %v1693_v30 = vadd.f32 %v451_v10, %v403_v18  ;;  %v1695_v31 = vadd.f32 %v452_v16, %v404_v19  ;;  %v454_v32 = vunpack.c.h.bf16 %v431_v12  ;;  %v327_v33 = vunpack.c.l.bf16 %v304_v17  ;;  %v435_v12 = vld [vmem:[#allocation7 + $0x50] sm:$0xff]  ;;  %v308_v19 = vld [vmem:[%s1629_s15 + $0x58] sm:$0xff] }
  0x90   : > { %520 = vadd.xlane.f32.xlu0 %v519_v23  ;;  %v405_v35 = vadd.f32 %v373_v24, %v325_v20  ;;  %v406_v36 = vadd.f32 %v374_v25, %v326_v21  ;;  %v328_v39 = vunpack.c.h.bf16 %v304_v17  ;;  %v375_v40 = vunpack.c.l.bf16 %v352_v22  ;;  %v356_v24 = vld [vmem:[%s1637_s17 + $0x58] sm:$0xff] }
  0x91   : > { %v522_v42 = vadd.f32 %v1695_v31, %v1693_v30  ;;  %v376_v43 = vunpack.c.h.bf16 %v352_v22  ;;  %v455_v44 = vunpack.c.l.bf16 %v432_v29  ;;  %v456_v45 = vunpack.c.h.bf16 %v432_v29 }
  0x92   : > { %v1701_v47 = vadd.f32 %v453_v28, %v405_v35  ;;  %v1703_v48 = vadd.f32 %v454_v32, %v406_v36  ;;  %v407_v49 = vadd.f32 %v375_v40, %v327_v33  ;;  %v329_v50 = vunpack.c.l.bf16 %v305_v34  ;;  %v436_v33 = vld [vmem:[#allocation7 + $0x58] sm:$0xff]  ;;  %v309_v40 = vld [vmem:[%s1629_s15 + $0x60] sm:$0xff] }
  0x93   : > { %523 = vadd.xlane.f32.xlu1 %v522_v42  ;;  %v408_v54 = vadd.f32 %v376_v43, %v328_v39  ;;  %v330_v55 = vunpack.c.h.bf16 %v305_v34  ;;  %v377_v56 = vunpack.c.l.bf16 %v353_v41  ;;  %v378_v57 = vunpack.c.h.bf16 %v353_v41 }
  0x94   : > { %v525_v60 = vadd.f32 %v1703_v48, %v1701_v47  ;;  %v1709_v61 = vadd.f32 %v455_v44, %v407_v49  ;;  %v457_v62 = vunpack.c.l.bf16 %v433_v46  ;;  %v458_v0 = vunpack.c.h.bf16 %v433_v46 }
  0x95   : > { %v1711_v1 = vadd.f32 %v456_v45, %v408_v54  ;;  %v409_v3 = vadd.f32 %v377_v56, %v329_v50  ;;  %v410_v4 = vadd.f32 %v378_v57, %v330_v55  ;;  %v331_v5 = vunpack.c.l.bf16 %v306_v53  ;;  %v357_v45 = vld [vmem:[%s1637_s17 + $0x60] sm:$0xff] }
  0x96   : > { %526 = vadd.xlane.f32.xlu0 %v525_v60  ;;  %v332_v7 = vunpack.c.h.bf16 %v306_v53  ;;  %v379_v8 = vunpack.c.l.bf16 %v354_v58  ;;  %v380_v9 = vunpack.c.h.bf16 %v354_v58  ;;  %v459_v10 = vunpack.c.l.bf16 %v434_v59  ;;  %v437_v54 = vld [vmem:[#allocation7 + $0x60] sm:$0xff] }
  0x97   : > { %v528_v13 = vadd.f32 %v1711_v1, %v1709_v61  ;;  %v1717_v16 = vadd.f32 %v457_v62, %v409_v3  ;;  %v1719_v17 = vadd.f32 %v458_v0, %v410_v4  ;;  %v460_v18 = vunpack.c.h.bf16 %v434_v59  ;;  %v310_v59 = vld [vmem:[%s1629_s15 + $0x68] sm:$0xff] }
  0x98   : > { %v411_v20 = vadd.f32 %v379_v8, %v331_v5  ;;  %v412_v21 = vadd.f32 %v380_v9, %v332_v7  ;;  %v333_v22 = vunpack.c.l.bf16 %v307_v6  ;;  %v334_v23 = vunpack.c.h.bf16 %v307_v6  ;;  %v358_v4 = vld [vmem:[%s1637_s17 + $0x68] sm:$0xff] }
  0x99   : > { %529 = vadd.xlane.f32.xlu1 %v528_v13  ;;  %v531_v25 = vadd.f32 %v1719_v17, %v1717_v16  ;;  %v381_v28 = vunpack.c.l.bf16 %v355_v11  ;;  %v382_v29 = vunpack.c.h.bf16 %v355_v11  ;;  %v461_v32 = vunpack.c.l.bf16 %v435_v12  ;;  %v438_v5 = vld [vmem:[#allocation7 + $0x68] sm:$0xff] }
  0x9a   : > { %v1725_v34 = vadd.f32 %v459_v10, %v411_v20  ;;  %v1727_v35 = vadd.f32 %v460_v18, %v412_v21  ;;  %v462_v36 = vunpack.c.h.bf16 %v435_v12  ;;  %v335_v39 = vunpack.c.l.bf16 %v308_v19  ;;  %v311_v18 = vld [vmem:[%s1629_s15 + $0x70] sm:$0xff] }
  0x9b   : > { %532 = vadd.xlane.f32.xlu0 %v531_v25  ;;  %v413_v41 = vadd.f32 %v381_v28, %v333_v22  ;;  %v414_v42 = vadd.f32 %v382_v29, %v334_v23  ;;  %v336_v43 = vunpack.c.h.bf16 %v308_v19  ;;  %v383_v44 = vunpack.c.l.bf16 %v356_v24  ;;  %v359_v23 = vld [vmem:[%s1637_s17 + $0x70] sm:$0xff] }
  0x9c   : > { %v534_v46 = vadd.f32 %v1727_v35, %v1725_v34  ;;  %v384_v49 = vunpack.c.h.bf16 %v356_v24  ;;  %v463_v50 = vunpack.c.l.bf16 %v436_v33  ;;  %v464_v53 = vunpack.c.h.bf16 %v436_v33  ;;  %v439_v24 = vld [vmem:[#allocation7 + $0x70] sm:$0xff]  ;;  %v312_v33 = vld [vmem:[%s1629_s15 + $0x78] sm:$0xff] }
  0x9d   : > { %v1733_v55 = vadd.f32 %v461_v32, %v413_v41  ;;  %v1735_v56 = vadd.f32 %v462_v36, %v414_v42  ;;  %v415_v57 = vadd.f32 %v383_v44, %v335_v39  ;;  %v337_v58 = vunpack.c.l.bf16 %v309_v40  ;;  %v360_v42 = vld [vmem:[%s1637_s17 + $0x78] sm:$0xff] }
  0x9e   : > { %535 = vadd.xlane.f32.xlu1 %v534_v46  ;;  %v416_v60 = vadd.f32 %v384_v49, %v336_v43  ;;  %v338_v62 = vunpack.c.h.bf16 %v309_v40  ;;  %v385_v0 = vunpack.c.l.bf16 %v357_v45  ;;  %v386_v3 = vunpack.c.h.bf16 %v357_v45  ;;  %v440_v49 = vld [vmem:[#allocation7 + $0x78] sm:$0xff] }
  0x9f   : > { %v537_v6 = vadd.f32 %v1735_v56, %v1733_v55  ;;  %v1741_v7 = vadd.f32 %v463_v50, %v415_v57  ;;  %v465_v8 = vunpack.c.l.bf16 %v437_v54  ;;  %v466_v9 = vunpack.c.h.bf16 %v437_v54 }
  0xa0   : > { %v1743_v10 = vadd.f32 %v464_v53, %v416_v60  ;;  %v417_v11 = vadd.f32 %v385_v0, %v337_v58  ;;  %v418_v12 = vadd.f32 %v386_v3, %v338_v62  ;;  %v339_v13 = vunpack.c.l.bf16 %v310_v59 }
  0xa1   : > { %538 = vadd.xlane.f32.xlu0 %v537_v6  ;;  %v340_v19 = vunpack.c.h.bf16 %v310_v59  ;;  %v387_v20 = vunpack.c.l.bf16 %v358_v4  ;;  %v388_v21 = vunpack.c.h.bf16 %v358_v4  ;;  %v467_v22 = vunpack.c.l.bf16 %v438_v5 }
  0xa2   : > { %v540_v25 = vadd.f32 %v1743_v10, %v1741_v7  ;;  %v1749_v28 = vadd.f32 %v465_v8, %v417_v11  ;;  %v1751_v29 = vadd.f32 %v466_v9, %v418_v12  ;;  %v468_v32 = vunpack.c.h.bf16 %v438_v5 }
  0xa3   : > { %v419_v36 = vadd.f32 %v387_v20, %v339_v13  ;;  %v420_v39 = vadd.f32 %v388_v21, %v340_v19  ;;  %v341_v40 = vunpack.c.l.bf16 %v311_v18  ;;  %v342_v41 = vunpack.c.h.bf16 %v311_v18 }
  0xa4   : > { %541 = vadd.xlane.f32.xlu1 %v540_v25  ;;  %v543_v43 = vadd.f32 %v1751_v29, %v1749_v28  ;;  %v389_v44 = vunpack.c.l.bf16 %v359_v23  ;;  %v390_v45 = vunpack.c.h.bf16 %v359_v23  ;;  %v469_v46 = vunpack.c.l.bf16 %v439_v24 }
  0xa5   : > { %v1757_v50 = vadd.f32 %v467_v22, %v419_v36  ;;  %v1759_v53 = vadd.f32 %v468_v32, %v420_v39  ;;  %v470_v54 = vunpack.c.h.bf16 %v439_v24  ;;  %v343_v57 = vunpack.c.l.bf16 %v312_v33 }
  0xa6   : > { %544 = vadd.xlane.f32.xlu0 %v543_v43  ;;  %v421_v58 = vadd.f32 %v389_v44, %v341_v40  ;;  %v422_v59 = vadd.f32 %v390_v45, %v342_v41  ;;  %v344_v60 = vunpack.c.h.bf16 %v312_v33  ;;  %v391_v62 = vunpack.c.l.bf16 %v360_v42 }
  0xa7   : > { %v546_v0 = vadd.f32 %v1759_v53, %v1757_v50  ;;  %v392_v3 = vunpack.c.h.bf16 %v360_v42  ;;  %v471_v4 = vunpack.c.l.bf16 %v440_v49  ;;  %v472_v5 = vunpack.c.h.bf16 %v440_v49 }
  0xa8   : > { %v1763_v6 = vadd.f32 %v469_v46, %v421_v58  ;;  %v1765_v8 = vadd.f32 %v470_v54, %v422_v59  ;;  %v423_v9 = vadd.f32 %v391_v62, %v343_v57 }
  0xa9   : > { %547 = vadd.xlane.f32.xlu1 %v546_v0  ;;  %v424_v11 = vadd.f32 %v392_v3, %v344_v60 }
  0xaa   : > { %v549_v12 = vadd.f32 %v1765_v8, %v1763_v6  ;;  %v1769_v13 = vadd.f32 %v471_v4, %v423_v9 }
  0xab   : > { %v1771_v18 = vadd.f32 %v472_v5, %v424_v11 }
  0xac   : > { %550 = vadd.xlane.f32.xlu0 %v549_v12 }
  0xad   : > { %v552_v19 = vadd.f32 %v1771_v18, %v1769_v13 }
  0xaf   : > { %553 = vadd.xlane.f32.xlu1 %v552_v19 }
 0x114   : > { %v509_v20 = vpop.xlane.xlu0 %508 }
 0x115   : > { %v556_v21 = vmul.f32 0.00390625, %v509_v20  ;;  %v515_v22 = vpop.xlane.xlu1 %514 }
 0x116   : > { %v558_v25 = vmul.f32 0.00390625, %v515_v22 }
 0x117   : > { %v1776_v23 = vsub.f32 %v1654_v26, %v556_v21  ;;  %v1779_v24 = vsub.f32 %v1656_v27, %v556_v21 }
 0x118   : > { %v1782_v32 = vsub.f32 %v1661_v37, %v558_v25  ;;  %v1785_v33 = vsub.f32 %v1663_v38, %v558_v25  ;;  %v512_v36 = vpop.xlane.xlu0 %511 }
 0x119   : > { %v604_v39 = vmul.f32 %v1776_v23, %v1776_v23  ;;  %v605_v40 = vmul.f32 %v1779_v24, %v1779_v24  ;;  %v557_v41 = vmul.f32 0.00390625, %v512_v36 }
 0x11a   : > { %v608_v27 = vmul.f32 %v1782_v32, %v1782_v32  ;;  %v609_v42 = vmul.f32 %v1785_v33, %v1785_v33 }
 0x11b   : > { %v636_v26 = vadd.f32 %v605_v40, %v604_v39  ;;  %v1796_v37 = vsub.f32 %v1669_v51, %v557_v41  ;;  %v1799_v38 = vsub.f32 %v1671_v52, %v557_v41  ;;  %v518_v43 = vpop.xlane.xlu1 %517 }
 0x11c   : > { %v559_v44 = vmul.f32 0.00390625, %v518_v43  ;;  %v642_v45 = vadd.f32 %v609_v42, %v608_v27 }
 0x11d   : > { %637 = vadd.xlane.f32.xlu0 %v636_v26  ;;  %v521_v46 = vpop.xlane.xlu0 %520  ;;  %v606_v49 = vmul.f32 %v1796_v37, %v1796_v37  ;;  %v607_v54 = vmul.f32 %v1799_v38, %v1799_v38 }
 0x11e   : > { %v1806_v57 = vsub.f32 %v1677_v63, %v559_v44  ;;  %v1809_v51 = vsub.f32 %v1679_v2, %v559_v44  ;;  %v560_v58 = vmul.f32 0.00390625, %v521_v46 }
 0x11f   : > { %v639_v52 = vadd.f32 %v607_v54, %v606_v49 }
 0x120   : > { %v1812_v59 = vsub.f32 %v1685_v14, %v560_v58  ;;  %v1815_v60 = vsub.f32 %v1687_v15, %v560_v58  ;;  %v524_v62 = vpop.xlane.xlu1 %523  ;;  %v610_v0 = vmul.f32 %v1806_v57, %v1806_v57  ;;  %v611_v63 = vmul.f32 %v1809_v51, %v1809_v51 }
 0x121   : > { %643 = vadd.xlane.f32.xlu0 %v642_v45  ;;  %v561_v3 = vmul.f32 0.00390625, %v524_v62  ;;  %640 = vadd.xlane.f32.xlu1 %v639_v52 }
 0x122   : > { %v645_v2 = vadd.f32 %v611_v63, %v610_v0  ;;  %v612_v4 = vmul.f32 %v1812_v59, %v1812_v59  ;;  %v613_v14 = vmul.f32 %v1815_v60, %v1815_v60 }
 0x123   : > { %v1826_v15 = vsub.f32 %v1693_v30, %v561_v3  ;;  %v1829_v5 = vsub.f32 %v1695_v31, %v561_v3  ;;  %v527_v9 = vpop.xlane.xlu0 %526 }
 0x124   : > { %v562_v11 = vmul.f32 0.00390625, %v527_v9  ;;  %v648_v12 = vadd.f32 %v613_v14, %v612_v4 }
 0x125   : > { %646 = vadd.xlane.f32.xlu1 %v645_v2  ;;  %v614_v19 = vmul.f32 %v1826_v15, %v1826_v15  ;;  %v615_v20 = vmul.f32 %v1829_v5, %v1829_v5 }
 0x126   : > { %v1836_v21 = vsub.f32 %v1701_v47, %v562_v11  ;;  %v1839_v22 = vsub.f32 %v1703_v48, %v562_v11  ;;  %v530_v30 = vpop.xlane.xlu1 %529  ;;  %649 = vadd.xlane.f32.xlu0 %v648_v12 }
 0x127   : > { %v563_v31 = vmul.f32 0.00390625, %v530_v30  ;;  %v651_v25 = vadd.f32 %v615_v20, %v614_v19 }
 0x128   : > { %v533_v36 = vpop.xlane.xlu0 %532  ;;  %v616_v39 = vmul.f32 %v1836_v21, %v1836_v21  ;;  %v617_v40 = vmul.f32 %v1839_v22, %v1839_v22 }
 0x129   : > { %v1846_v41 = vsub.f32 %v1709_v61, %v563_v31  ;;  %v1849_v47 = vsub.f32 %v1711_v1, %v563_v31  ;;  %v564_v26 = vmul.f32 0.00390625, %v533_v36  ;;  %652 = vadd.xlane.f32.xlu1 %v651_v25 }
 0x12a   : > { %v654_v48 = vadd.f32 %v617_v40, %v616_v39 }
 0x12b   : > { %v1852_v27 = vsub.f32 %v1717_v16, %v564_v26  ;;  %v1855_v42 = vsub.f32 %v1719_v17, %v564_v26  ;;  %v536_v43 = vpop.xlane.xlu1 %535  ;;  %v618_v44 = vmul.f32 %v1846_v41, %v1846_v41  ;;  %v619_v61 = vmul.f32 %v1849_v47, %v1849_v47 }
 0x12c   : > { %v565_v45 = vmul.f32 0.00390625, %v536_v43  ;;  %655 = vadd.xlane.f32.xlu0 %v654_v48 }
 0x12d   : > { %v657_v1 = vadd.f32 %v619_v61, %v618_v44  ;;  %v620_v46 = vmul.f32 %v1852_v27, %v1852_v27  ;;  %v621_v16 = vmul.f32 %v1855_v42, %v1855_v42 }
 0x12e   : > { %v1866_v49 = vsub.f32 %v1725_v34, %v565_v45  ;;  %v1869_v17 = vsub.f32 %v1727_v35, %v565_v45  ;;  %v539_v54 = vpop.xlane.xlu0 %538 }
 0x12f   : > { %v566_v58 = vmul.f32 0.00390625, %v539_v54  ;;  %658 = vadd.xlane.f32.xlu1 %v657_v1  ;;  %v660_v52 = vadd.f32 %v621_v16, %v620_v46 }
 0x130   : > { %v622_v62 = vmul.f32 %v1866_v49, %v1866_v49  ;;  %v623_v0 = vmul.f32 %v1869_v17, %v1869_v17 }
 0x131   : > { %v1876_v63 = vsub.f32 %v1733_v55, %v566_v58  ;;  %v1879_v3 = vsub.f32 %v1735_v56, %v566_v58  ;;  %v542_v34 = vpop.xlane.xlu1 %541  ;;  %661 = vadd.xlane.f32.xlu0 %v660_v52 }
 0x132   : > { %v567_v35 = vmul.f32 0.00390625, %v542_v34  ;;  %v663_v2 = vadd.f32 %v623_v0, %v622_v62 }
 0x133   : > { %v545_v4 = vpop.xlane.xlu0 %544  ;;  %v624_v14 = vmul.f32 %v1876_v63, %v1876_v63  ;;  %v625_v9 = vmul.f32 %v1879_v3, %v1879_v3 }
 0x134   : > { %v1886_v11 = vsub.f32 %v1741_v7, %v567_v35  ;;  %v1889_v55 = vsub.f32 %v1743_v10, %v567_v35  ;;  %v568_v12 = vmul.f32 0.00390625, %v545_v4  ;;  %664 = vadd.xlane.f32.xlu1 %v663_v2  ;;  %v765_v35 = vlaneseq }
 0x135   : > { %v666_v56 = vadd.f32 %v625_v9, %v624_v14 }
 0x136   : > { %v1892_v19 = vsub.f32 %v1749_v28, %v568_v12  ;;  %v1895_v20 = vsub.f32 %v1751_v29, %v568_v12  ;;  %v548_v30 = vpop.xlane.xlu1 %547  ;;  %v626_v31 = vmul.f32 %v1886_v11, %v1886_v11  ;;  %v627_v7 = vmul.f32 %v1889_v55, %v1889_v55 }
 0x137   : > { %v569_v25 = vmul.f32 0.00390625, %v548_v30  ;;  %667 = vadd.xlane.f32.xlu0 %v666_v56  ;;  %v766_v14 = vshrl.u32 %v765_v35, 7 }
 0x138   : > { %v669_v10 = vadd.f32 %v627_v7, %v626_v31  ;;  %v628_v36 = vmul.f32 %v1892_v19, %v1892_v19  ;;  %v629_v28 = vmul.f32 %v1895_v20, %v1895_v20 }
 0x139   : > { %v1906_v39 = vsub.f32 %v1757_v50, %v569_v25  ;;  %v1909_v29 = vsub.f32 %v1759_v53, %v569_v25  ;;  %v551_v40 = vpop.xlane.xlu0 %550  ;;  %v767_v31 = vsub.s32 0, %v766_v14  ;;  %v771_v7 = vsub.s32 1, %v766_v14 }
 0x13a   : > { %v570_v26 = vmul.f32 0.00390625, %v551_v40  ;;  %670 = vadd.xlane.f32.xlu1 %v669_v10  ;;  %v672_v48 = vadd.f32 %v629_v28, %v628_v36  ;;  %v505_v36 = vld [vmem:[%s2118_s3] sm:$0x3] }
 0x13b   : > { %v630_v43 = vmul.f32 %v1906_v39, %v1906_v39  ;;  %v631_v44 = vmul.f32 %v1909_v29, %v1909_v29  ;;  %v506_v40 = vld [vmem:[%s2119_s4] sm:$0x3] }
 0x13c   : > { %v1916_v61 = vsub.f32 %v1763_v6, %v570_v26  ;;  %v1919_v45 = vsub.f32 %v1765_v8, %v570_v26  ;;  %v554_v50 = vpop.xlane.xlu1 %553  ;;  %673 = vadd.xlane.f32.xlu0 %v672_v48 }
 0x13d   : > { %v571_v53 = vmul.f32 0.00390625, %v554_v50  ;;  %v675_v1 = vadd.f32 %v631_v44, %v630_v43  ;;  %v1941_v44 = vrot.slane %v505_v36, %v767_v31  ;;  %v1943_v50 = vrot.slane %v505_v36, %v771_v7 }
 0x13e   : > { %v632_v46 = vmul.f32 %v1916_v61, %v1916_v61  ;;  %v633_v16 = vmul.f32 %v1919_v45, %v1919_v45 }
 0x13f   : > { %v1926_v54 = vsub.f32 %v1769_v13, %v571_v53  ;;  %v1929_v58 = vsub.f32 %v1771_v18, %v571_v53  ;;  %676 = vadd.xlane.f32.xlu1 %v675_v1 }
 0x140   : > { %v678_v6 = vadd.f32 %v633_v16, %v632_v46  ;;  %v1945_v46 = vrot.slane %v506_v40, %v767_v31  ;;  %v1947_v16 = vrot.slane %v506_v40, %v771_v7 }
 0x141   : > { %v634_v8 = vmul.f32 %v1926_v54, %v1926_v54  ;;  %v635_v52 = vmul.f32 %v1929_v58, %v1929_v58 }
 0x142   : > { %679 = vadd.xlane.f32.xlu0 %v678_v6 }
 0x143   : > { %v681_v62 = vadd.f32 %v635_v52, %v634_v8 }
 0x145   : > { %682 = vadd.xlane.f32.xlu1 %v681_v62 }
 0x1aa   : > { %v638_v0 = vpop.xlane.xlu0 %637 }
 0x1ab   : > { %v684_v34 = vmul.f32 0.00390625, %v638_v0 }
 0x1ad   : > { %v700_v2 = vadd.f32 1e-12, %v684_v34 }
 0x1ae   : > { %v644_v13 = vpop.xlane.xlu0 %643  ;;  %v641_v4 = vpop.xlane.xlu1 %640 }
 0x1af   : > { %1202 = vrsqrt.f32 %v700_v2  ;;  %v686_v18 = vmul.f32 0.00390625, %v644_v13  ;;  %v685_v9 = vmul.f32 0.00390625, %v641_v4 }
 0x1b1   : > { %v702_v12 = vadd.f32 1e-12, %v686_v18  ;;  %v701_v56 = vadd.f32 1e-12, %v685_v9 }
 0x1b2   : > { %v647_v30 = vpop.xlane.xlu1 %646 }
 0x1b3   : > { %1204 = vrsqrt.f32 %v702_v12  ;;  %v687_v25 = vmul.f32 0.00390625, %v647_v30  ;;  %v650_v10 = vpop.xlane.xlu0 %649 }
 0x1b4   : > { %1206 = vrsqrt.f32 %v701_v56  ;;  %v688_v28 = vmul.f32 0.00390625, %v650_v10 }
 0x1b5   : > { %v703_v26 = vadd.f32 1e-12, %v687_v25 }
 0x1b6   : > { %v704_v48 = vadd.f32 1e-12, %v688_v28  ;;  %v653_v43 = vpop.xlane.xlu1 %652 }
 0x1b7   : > { %1208 = vrsqrt.f32 %v703_v26  ;;  %v689_v53 = vmul.f32 0.00390625, %v653_v43 }
 0x1b8   : > { %1210 = vrsqrt.f32 %v704_v48 }
 0x1b9   : > { %v1203_v1 = vpop.eup %1202  ;;  %v705_v52 = vadd.f32 1e-12, %v689_v53  ;;  %v656_v62 = vpop.xlane.xlu0 %655 }
 0x1ba   : > { %v732_v6 = vmul.f32 %v1203_v1, %v1776_v23  ;;  %v733_v8 = vmul.f32 %v1203_v1, %v1779_v24  ;;  %v690_v0 = vmul.f32 0.00390625, %v656_v62 }
 0x1bb   : > { %1212 = vrsqrt.f32 %v705_v52 }
 0x1bc   : > { %v775_v34 = vmul.f32 %v1941_v44, %v732_v6  ;;  %v776_v35 = vmul.f32 %v1943_v50, %v733_v8  ;;  %v706_v13 = vadd.f32 1e-12, %v690_v0  ;;  %v659_v4 = vpop.xlane.xlu1 %658 }
 0x1bd   : > { %v1205_v2 = vpop.eup %1204  ;;  %v691_v30 = vmul.f32 0.00390625, %v659_v4 }
 0x1be   : > { %v1207_v18 = vpop.eup %1206  ;;  %v818_v14 = vadd.f32 %v1945_v46, %v775_v34  ;;  %v819_v9 = vadd.f32 %v1947_v16, %v776_v35  ;;  %v736_v23 = vmul.f32 %v1205_v2, %v1782_v32  ;;  %v737_v24 = vmul.f32 %v1205_v2, %v1785_v33  ;;  %v662_v31 = vpop.xlane.xlu0 %661 }
 0x1bf   : > { %v734_v12 = vmul.f32 %v1207_v18, %v1796_v37  ;;  %v735_v56 = vmul.f32 %v1207_v18, %v1799_v38  ;;  %1214 = vrsqrt.f32 %v706_v13  ;;  %v692_v36 = vmul.f32 0.00390625, %v662_v31 }
 0x1c0   : > { %v1119_v7 = vpack.c.bf16 %v819_v9, %v818_v14  ;;  %v779_v25 = vmul.f32 %v1941_v44, %v736_v23  ;;  %v780_v10 = vmul.f32 %v1943_v50, %v737_v24  ;;  %v707_v32 = vadd.f32 1e-12, %v691_v30 }
 0x1c1   : > { %v777_v28 = vmul.f32 %v1941_v44, %v734_v12  ;;  %v778_v40 = vmul.f32 %v1943_v50, %v735_v56  ;;  %v1209_v26 = vpop.eup %1208  ;;  %v708_v38 = vadd.f32 1e-12, %v692_v36  ;;  %v665_v48 = vpop.xlane.xlu1 %664 }
 0x1c2   : > { %946 = vst [vmem:[%s1964_s6] sm:$0xff] %v1119_v7  ;;  %v822_v33 = vadd.f32 %v1945_v46, %v779_v25  ;;  %v823_v37 = vadd.f32 %v1947_v16, %v780_v10  ;;  %v1211_v43 = vpop.eup %1210  ;;  %v738_v6 = vmul.f32 %v1209_v26, %v1806_v57  ;;  %v739_v8 = vmul.f32 %v1209_v26, %v1809_v51 }
 0x1c3   : > { %v820_v53 = vadd.f32 %v1945_v46, %v777_v28  ;;  %v821_v1 = vadd.f32 %v1947_v16, %v778_v40  ;;  %v740_v62 = vmul.f32 %v1211_v43, %v1812_v59  ;;  %v741_v0 = vmul.f32 %v1211_v43, %v1815_v60 }
 0x1c4   : > { %v1121_v52 = vpack.c.bf16 %v823_v37, %v822_v33  ;;  %1216 = vrsqrt.f32 %v707_v32  ;;  %v781_v35 = vmul.f32 %v1941_v44, %v738_v6  ;;  %v782_v2 = vmul.f32 %v1943_v50, %v739_v8  ;;  %v668_v13 = vpop.xlane.xlu0 %667 }
 0x1c5   : > { %v1120_v34 = vpack.c.bf16 %v821_v1, %v820_v53  ;;  %1218 = vrsqrt.f32 %v708_v38  ;;  %v1213_v4 = vpop.eup %1212  ;;  %v783_v57 = vmul.f32 %v1941_v44, %v740_v62  ;;  %v784_v51 = vmul.f32 %v1943_v50, %v741_v0 }
 0x1c6   : > { %948 = vst [vmem:[%s1964_s6 + $0x10] sm:$0xff] %v1121_v52  ;;  %v693_v18 = vmul.f32 0.00390625, %v665_v48  ;;  %v694_v14 = vmul.f32 0.00390625, %v668_v13  ;;  %v824_v59 = vadd.f32 %v1945_v46, %v781_v35  ;;  %v825_v60 = vadd.f32 %v1947_v16, %v782_v2 }
 0x1c7   : > { %947 = vst [vmem:[%s1964_s6 + $0x8] sm:$0xff] %v1120_v34  ;;  %v742_v9 = vmul.f32 %v1213_v4, %v1826_v15  ;;  %v743_v23 = vmul.f32 %v1213_v4, %v1829_v5  ;;  %v826_v24 = vadd.f32 %v1945_v46, %v783_v57  ;;  %v827_v12 = vadd.f32 %v1947_v16, %v784_v51  ;;  %v671_v31 = vpop.xlane.xlu1 %670 }
 0x1c8   : > { %v709_v56 = vadd.f32 1e-12, %v693_v18  ;;  %v710_v30 = vadd.f32 1e-12, %v694_v14  ;;  %v1122_v25 = vpack.c.bf16 %v825_v60, %v824_v59  ;;  %v695_v28 = vmul.f32 0.00390625, %v671_v31 }
 0x1c9   : > { %v1215_v7 = vpop.eup %1214  ;;  %v785_v10 = vmul.f32 %v1941_v44, %v742_v9  ;;  %v786_v36 = vmul.f32 %v1943_v50, %v743_v23  ;;  %v1123_v40 = vpack.c.bf16 %v827_v12, %v826_v24  ;;  %v674_v32 = vpop.xlane.xlu0 %673 }
 0x1ca   : > { %v744_v15 = vmul.f32 %v1215_v7, %v1836_v21  ;;  %v745_v5 = vmul.f32 %v1215_v7, %v1839_v22  ;;  %1220 = vrsqrt.f32 %v709_v56  ;;  %949 = vst [vmem:[%s1964_s6 + $0x18] sm:$0xff] %v1122_v25  ;;  %v711_v37 = vadd.f32 1e-12, %v695_v28 }
 0x1cb   : > { %v828_v26 = vadd.f32 %v1945_v46, %v785_v10  ;;  %v829_v33 = vadd.f32 %v1947_v16, %v786_v36  ;;  %1222 = vrsqrt.f32 %v710_v30  ;;  %950 = vst [vmem:[%s1964_s6 + $0x20] sm:$0xff] %v1123_v40  ;;  %v696_v43 = vmul.f32 0.00390625, %v674_v32 }
 0x1cc   : > { %v787_v38 = vmul.f32 %v1941_v44, %v744_v15  ;;  %v788_v48 = vmul.f32 %v1943_v50, %v745_v5  ;;  %1224 = vrsqrt.f32 %v711_v37  ;;  %v677_v21 = vpop.xlane.xlu1 %676 }
 0x1cd   : > { %v1124_v53 = vpack.c.bf16 %v829_v33, %v828_v26  ;;  %v712_v8 = vadd.f32 1e-12, %v696_v43  ;;  %v697_v52 = vmul.f32 0.00390625, %v677_v21 }
 0x1ce   : > { %v1217_v22 = vpop.eup %1216  ;;  %v830_v1 = vadd.f32 %v1945_v46, %v787_v38  ;;  %v831_v6 = vadd.f32 %v1947_v16, %v788_v48 }
 0x1cf   : > { %v1219_v62 = vpop.eup %1218  ;;  %951 = vst [vmem:[%s1964_s6 + $0x28] sm:$0xff] %v1124_v53  ;;  %v746_v0 = vmul.f32 %v1217_v22, %v1846_v41  ;;  %v747_v34 = vmul.f32 %v1217_v22, %v1849_v47  ;;  %1226 = vrsqrt.f32 %v712_v8  ;;  %v680_v4 = vpop.xlane.xlu0 %679  ;;  %v713_v18 = vadd.f32 1e-12, %v697_v52 }
 0x1d0   : > { %v1125_v35 = vpack.c.bf16 %v831_v6, %v830_v1  ;;  %v748_v2 = vmul.f32 %v1219_v62, %v1852_v27  ;;  %v749_v13 = vmul.f32 %v1219_v62, %v1855_v42  ;;  %v698_v14 = vmul.f32 0.00390625, %v680_v4 }
 0x1d1   : > { %v789_v57 = vmul.f32 %v1941_v44, %v746_v0  ;;  %v790_v51 = vmul.f32 %v1943_v50, %v747_v34  ;;  %1228 = vrsqrt.f32 %v713_v18 }
 0x1d2   : > { %952 = vst [vmem:[%s1964_s6 + $0x30] sm:$0xff] %v1125_v35  ;;  %v791_v59 = vmul.f32 %v1941_v44, %v748_v2  ;;  %v792_v41 = vmul.f32 %v1943_v50, %v749_v13  ;;  %v714_v27 = vadd.f32 1e-12, %v698_v14  ;;  %v683_v42 = vpop.xlane.xlu1 %682 }
 0x1d3   : > { %v832_v47 = vadd.f32 %v1945_v46, %v789_v57  ;;  %v833_v60 = vadd.f32 %v1947_v16, %v790_v51  ;;  %v699_v12 = vmul.f32 0.00390625, %v683_v42 }
 0x1d4   : > { %v1221_v9 = vpop.eup %1220  ;;  %v834_v23 = vadd.f32 %v1945_v46, %v791_v59  ;;  %v835_v24 = vadd.f32 %v1947_v16, %v792_v41  ;;  %1230 = vrsqrt.f32 %v714_v27 }
 0x1d5   : > { %v1223_v56 = vpop.eup %1222  ;;  %v1126_v30 = vpack.c.bf16 %v833_v60, %v832_v47  ;;  %v750_v31 = vmul.f32 %v1221_v9, %v1866_v49  ;;  %v751_v7 = vmul.f32 %v1221_v9, %v1869_v17  ;;  %v715_v28 = vadd.f32 1e-12, %v699_v12 }
 0x1d6   : > { %v1127_v25 = vpack.c.bf16 %v835_v24, %v834_v23  ;;  %v752_v10 = vmul.f32 %v1223_v56, %v1876_v63  ;;  %v753_v36 = vmul.f32 %v1223_v56, %v1879_v3  ;;  %v1225_v40 = vpop.eup %1224 }
 0x1d7   : > { %953 = vst [vmem:[%s1964_s6 + $0x38] sm:$0xff] %v1126_v30  ;;  %v793_v15 = vmul.f32 %v1941_v44, %v750_v31  ;;  %v794_v5 = vmul.f32 %v1943_v50, %v751_v7  ;;  %v754_v17 = vmul.f32 %v1225_v40, %v1886_v11  ;;  %v755_v26 = vmul.f32 %v1225_v40, %v1889_v55 }
 0x1d8   : > { %954 = vst [vmem:[%s1964_s6 + $0x40] sm:$0xff] %v1127_v25  ;;  %v795_v32 = vmul.f32 %v1941_v44, %v752_v10  ;;  %v796_v49 = vmul.f32 %v1943_v50, %v753_v36  ;;  %1232 = vrsqrt.f32 %v715_v28 }
 0x1d9   : > { %v836_v63 = vadd.f32 %v1945_v46, %v793_v15  ;;  %v837_v3 = vadd.f32 %v1947_v16, %v794_v5  ;;  %v1227_v33 = vpop.eup %1226  ;;  %v797_v48 = vmul.f32 %v1941_v44, %v754_v17  ;;  %v798_v43 = vmul.f32 %v1943_v50, %v755_v26 }
 0x1da   : > { %v838_v37 = vadd.f32 %v1945_v46, %v795_v32  ;;  %v839_v38 = vadd.f32 %v1947_v16, %v796_v49  ;;  %v756_v11 = vmul.f32 %v1227_v33, %v1892_v19  ;;  %v757_v55 = vmul.f32 %v1227_v33, %v1895_v20 }
 0x1db   : > { %v1128_v53 = vpack.c.bf16 %v837_v3, %v836_v63  ;;  %v840_v22 = vadd.f32 %v1945_v46, %v797_v48  ;;  %v841_v1 = vadd.f32 %v1947_v16, %v798_v43  ;;  %v1229_v6 = vpop.eup %1228 }
 0x1dc   : > { %v1129_v21 = vpack.c.bf16 %v839_v38, %v838_v37  ;;  %v799_v8 = vmul.f32 %v1941_v44, %v756_v11  ;;  %v800_v52 = vmul.f32 %v1943_v50, %v757_v55  ;;  %v758_v0 = vmul.f32 %v1229_v6, %v1906_v39 }
 0x1dd   : > { %955 = vst [vmem:[%s1964_s6 + $0x48] sm:$0xff] %v1128_v53  ;;  %v1130_v62 = vpack.c.bf16 %v841_v1, %v840_v22  ;;  %v759_v19 = vmul.f32 %v1229_v6, %v1909_v29 }
 0x1de   : > { %956 = vst [vmem:[%s1964_s6 + $0x50] sm:$0xff] %v1129_v21  ;;  %v1231_v34 = vpop.eup %1230  ;;  %v842_v20 = vadd.f32 %v1945_v46, %v799_v8  ;;  %v843_v35 = vadd.f32 %v1947_v16, %v800_v52  ;;  %v801_v2 = vmul.f32 %v1941_v44, %v758_v0 }
 0x1df   : > { %957 = vst [vmem:[%s1964_s6 + $0x58] sm:$0xff] %v1130_v62  ;;  %v802_v13 = vmul.f32 %v1943_v50, %v759_v19  ;;  %v760_v4 = vmul.f32 %v1231_v34, %v1916_v61  ;;  %v761_v57 = vmul.f32 %v1231_v34, %v1919_v45 }
 0x1e0   : > { %v1131_v51 = vpack.c.bf16 %v843_v35, %v842_v20  ;;  %v844_v39 = vadd.f32 %v1945_v46, %v801_v2 }
 0x1e1   : > { %v845_v29 = vadd.f32 %v1947_v16, %v802_v13  ;;  %v803_v18 = vmul.f32 %v1941_v44, %v760_v4  ;;  %v804_v14 = vmul.f32 %v1943_v50, %v761_v57 }
 0x1e2   : > { %v1233_v59 = vpop.eup %1232  ;;  %958 = vst [vmem:[%s1964_s6 + $0x60] sm:$0xff] %v1131_v51 }
 0x1e3   : > { %v1132_v41 = vpack.c.bf16 %v845_v29, %v844_v39  ;;  %v846_v47 = vadd.f32 %v1945_v46, %v803_v18  ;;  %v847_v61 = vadd.f32 %v1947_v16, %v804_v14  ;;  %v762_v45 = vmul.f32 %v1233_v59, %v1926_v54 }
 0x1e4   : > { %v763_v60 = vmul.f32 %v1233_v59, %v1929_v58 }
 0x1e5   : > { %959 = vst [vmem:[%s1964_s6 + $0x68] sm:$0xff] %v1132_v41  ;;  %v1133_v27 = vpack.c.bf16 %v847_v61, %v846_v47  ;;  %v805_v42 = vmul.f32 %v1941_v44, %v762_v45 }
 0x1e6   : > { %v806_v9 = vmul.f32 %v1943_v50, %v763_v60 }
 0x1e7   : > { %960 = vst [vmem:[%s1964_s6 + $0x70] sm:$0xff] %v1133_v27  ;;  %v848_v23 = vadd.f32 %v1945_v46, %v805_v42 }
 0x1e8   : > { %v849_v24 = vadd.f32 %v1947_v16, %v806_v9 }
 0x1ea   : > { %v1134_v54 = vpack.c.bf16 %v849_v24, %v848_v23 }
 0x1ec   : > { %961 = vst [vmem:[%s1964_s6 + $0x78] sm:$0xff] %v1134_v54 }
 0x1ed   : > { %1335 = shalt.err (!%p1332_p6)
}
 0x1ee   : > { %s1336_s14 = scalar_lea.hbm %s2068_s11, 2048  ;;  %s1340_s27 = scalar_lea.hbm %s2120_s5, 4096 }
 0x1ef   : > { %p1337_p8 = scmp.ne.s32.totalorder %s2068_s11, %s1336_s14  ;;  %p1341_p4 = scmp.lt.u32.totalorder %s2068_s11, %s2120_s5 }
 0x1f0   : > { %p1342_p11 = scmp.lt.u32.totalorder %s1340_s27, %s1336_s14  ;;  %p1344_p3 = scmp.lt.u32.totalorder %s1336_s14, %s2068_s11 }
 0x1f1   : > { %p1338_p10 = pnand %p1337_p8, %p1530_p12 }
 0x1f2   : > { %p1343_p13 = por %p1342_p11, %p1341_p4 }
 0x1f3   : > { %p1339_p0 = pneg %p1338_p10 }
 0x1f4   : > { %p1345_p7 = por %p1344_p3, %p1343_p13 }
 0x1f6   : > { %p1346_p9 = pnand %p1345_p7, %p1339_p0 }
 0x1f8   : > { %1349 = shalt.err (!%p1346_p9)
}
 0x1f9   : > { %s1404_s8 = smov 128   ;;  %s1405_s23 = smov 8  }
 0x1fa   : > { %1144 = dma.vmem_to_hbm [thread:$0]  (%p1530_p12), %s2070_s16, 2048, %s2068_s11, %s963_s28, %s1404_s8, %s1404_s8, %s1405_s23  }
 0x1fb PF: > { %s991_s13 = sand.u32 1, %s1384_s18   ;;  %p2148_p1 = scmp.ne.s32.totalorder %s2133_s25, 0 }
 0x1fc   : > { %p2149_p5 = scmp.ge.s32.totalorder %s1396_s21, 2  ;;  %s992_s6 = scalar_lea.sflag [#allocation4], %s991_s13 }
 0x1fe   : > { %p1158_p2 = pnand %p2149_p5, %p2148_p1 }
 0x200   : > { %1379 = dma.done.wait (!%p1158_p2), %s992_s6, 2048  }
 0x201   : > { %1381 = vsyncadd (!%p1158_p2), %s992_s6, 4294965248  ;;  %s2150_s29 = sld [smem:[#allocation13_spill]]  ;;  %s2151_s20 = sld [smem:[#allocation14_spill]] }
 0x202   : > { %p21_p6 = scmp.ge.s32.totalorder %s1492_s30, 4   ;;  %s2152_s18 = smov %s1388_s19 }
 0x203   : > { %s2154_s21 = smov %s1492_s30 }
 0x204   :  { %23 = sbr.rel (!%p21_p6) target bundleno = 10 (0xa), region = 102 }
 0x207   : > { %s2153_s19 = smov %s2150_s29 }
 0x20b   :  { %997 = vsyncpa [#allocation3], 1 }
 0x20c   :  { %999 = vsyncpa [#allocation3 + $0x1], 1 }
 0x20d   :  { %1000 = vsyncpa [#allocation6], 1 }
 0x20e   :  { %1002 = vsyncpa [#allocation6 + $0x1], 1 }
 0x20f   :  { %1003 = vsyncpa [#allocation4], 1 }
 0x210   :  { %1005 = vsyncpa [#allocation4 + $0x1], 1 }

</bundles_post_ra>
